<compile_context>
chip_gen: v5e
topology: v5e:2x2
jax: 0.10.0
libtpu: 0.0.40
codegen_flags: <defaults>
</compile_context>

<pallas_src>
import functools

import jax
import jax.numpy as jnp
import numpy as np
from jax.experimental import pallas as pl
from jax.experimental.pallas import tpu as pltpu


# --------------------------------------------------------------------------
# Shared in-kernel helper: sigmoid(fc2(relu(fc1(avg))) + fc2(relu(fc1(mx))))
#   w1t: (C, Hd) == fc1_w.T, w2: (C, Hd) == fc2_w, avg/mx: (..., C, 1) f32
# --------------------------------------------------------------------------
def _mlp_sigmoid(w1t, w2, avg, mx):
    def mlp(v):
        h = jax.nn.relu(jnp.sum(w1t * v, axis=-2, keepdims=True))   # (...,1,Hd)
        return jnp.sum(w2 * h, axis=-1, keepdims=True)               # (...,C,1)
    return jax.nn.sigmoid(mlp(avg) + mlp(mx))


# --------------------------------------------------------------------------
# Path A: fused pooling + MLP + sigmoid + apply on a resident (bn, C, S) slab.
# --------------------------------------------------------------------------
def _fused_kernel(w1t_ref, w2_ref, x_ref, o_ref, *, inv_total):
    x = x_ref[...]                                                  # (bn, C, S)
    ssum = jnp.sum(x, axis=2, keepdims=True, dtype=jnp.float32)     # (bn, C, 1)
    smax = jnp.max(x, axis=2, keepdims=True).astype(jnp.float32)    # (bn, C, 1)
    attn = _mlp_sigmoid(w1t_ref[...], w2_ref[...], ssum * inv_total, smax)
    o_ref[...] = (attn.astype(x.dtype) * x).astype(o_ref.dtype)


# --------------------------------------------------------------------------
# Path B pass 1: streaming spatial reduction (sum/max) + MLP at the last step.
# Grid: (N, S_tiles); spatial axis is a reduction ("arbitrary").
# --------------------------------------------------------------------------
def _pool_mlp_kernel(w1t_ref, w2_ref, x_ref, attn_ref, sum_acc, max_acc,
                     *, inv_total):
    s = pl.program_id(1)

    @pl.when(s == 0)
    def _():
        sum_acc[...] = jnp.zeros_like(sum_acc)
        max_acc[...] = jnp.full_like(max_acc, -jnp.inf)

    xb = x_ref[0]                                                   # (C, TS)
    sum_acc[...] += jnp.sum(xb, axis=1, keepdims=True, dtype=jnp.float32)
    max_acc[...] = jnp.maximum(
        max_acc[...], jnp.max(xb, axis=1, keepdims=True).astype(jnp.float32))

    @pl.when(s == pl.num_programs(1) - 1)
    def _():
        attn_ref[0] = _mlp_sigmoid(w1t_ref[...], w2_ref[...],
                                   sum_acc[...] * inv_total, max_acc[...])


# --------------------------------------------------------------------------
# Path C pass 1: channel-tiled pooling (full spatial extent per block).
# --------------------------------------------------------------------------
def _pool_channel_kernel(x_ref, sum_ref, max_ref):
    xb = x_ref[0]                                                   # (tc, S)
    sum_ref[0] = jnp.sum(xb, axis=1, keepdims=True, dtype=jnp.float32)
    max_ref[0] = jnp.max(xb, axis=1, keepdims=True).astype(jnp.float32)


# --------------------------------------------------------------------------
# Path C pass 2: tiny per-image MLP + sigmoid over the pooled statistics.
# --------------------------------------------------------------------------
def _mlp_kernel(w1t_ref, w2_ref, sum_ref, max_ref, attn_ref, *, inv_total):
    attn_ref[0] = _mlp_sigmoid(w1t_ref[...], w2_ref[...],
                               sum_ref[0] * inv_total, max_ref[0])


# --------------------------------------------------------------------------
# Paths B/C final pass: lane-dense elementwise apply  out = attn * x
# --------------------------------------------------------------------------
def _apply_kernel(attn_ref, x_ref, o_ref):
    xb = x_ref[0]
    o_ref[0] = (attn_ref[0].astype(xb.dtype) * xb).astype(o_ref.dtype)


# --------------------------------------------------------------------------
# Generation-aware VMEM policy and tile selection.
# --------------------------------------------------------------------------
def _vmem_budgets():
    """Returns (vmem_limit_bytes, pipeline_block_budget_bytes)."""
    try:
        cap = int(pltpu.get_tpu_info().vmem_capacity_bytes)
    except Exception:
        cap = 64 * 1024 * 1024                 # conservative: v7x physical VMEM
    # v5e/v6e (128 MiB physical) -> 64 MiB scoped limit; v7x (64 MiB) -> 48 MiB.
    vmem_limit = int(min(cap * 3 // 4, 64 * 1024 * 1024))
    block_budget = vmem_limit - 4 * 1024 * 1024   # compiler-scratch headroom
    return vmem_limit, block_budget


def _largest_divisor_leq(n, m):
    best = 1
    for k in range(1, n + 1):
        if n % k == 0 and k <= m:
            best = k
    return best


def _pick_spatial_tile(S, C, itemsize, budget_bytes):
    """Largest multiple-of-128 divisor of S whose apply-pass footprint
    (in + out, double-buffered => 4 buffers) fits the budget. S % 128 == 0."""
    max_ts = max(128, budget_bytes // (4 * C * itemsize))
    ts, cand = 128, 128
    while cand <= S:
        if S % cand == 0 and cand <= max_ts:
            ts = cand
        cand += 128
    return ts


def _pick_channel_tile(C, S, itemsize, budget_bytes):
    """Largest multiple-of-8 divisor of C whose (1, tc, S) in+out
    double-buffered footprint fits the budget (best effort)."""
    max_tc = max(8, budget_bytes // (4 * S * itemsize))
    best = None
    for tc in range(8, C + 1, 8):
        if C % tc == 0 and tc <= max_tc:
            best = tc
    if best is None:
        # TODO(synk): degenerate few-channel / huge-S inputs would need padded
        # spatial tiling; fall back to a full-C block (best effort).
        best = C
    return best


@jax.jit
def channel_attention(x, fc1_w, fc2_w):
    """x: (N, C, H, W); fc1_w: (C//16, C, 1, 1); fc2_w: (C, C//16, 1, 1)."""
    N, C, H, W = x.shape
    Hd = fc1_w.shape[0]
    S = H * W
    isz = x.dtype.itemsize

    x2 = x.reshape(N, C, S)                                   # lane-dense layout
    w1t = fc1_w.reshape(Hd, C).T.astype(jnp.float32)          # (C, Hd)
    w2 = fc2_w.reshape(C, Hd).astype(jnp.float32)             # (C, Hd)
    inv_total = 1.0 / float(S)

    vmem_limit, block_budget = _vmem_budgets()
    wbuf = 2 * 2 * C * Hd * 4            # both weight arrays, double-buffered
    slab = C * S * isz                   # one image's x (== out) slab

    def cparams(sem):
        return pltpu.CompilerParams(dimension_semantics=sem,
                                    vmem_limit_bytes=vmem_limit)

    # ---------------- Path A: fused single pass ----------------
    max_bn = (block_budget - wbuf) // max(4 * slab, 1)
    if max_bn >= 1:
        # Target ~4 MiB x-blocks (enough to hit HBM roofline) by folding batch.
        bn_cap = max(1, (4 * 1024 * 1024) // max(slab, 1))
        bn = _largest_divisor_leq(N, max(1, min(int(max_bn), bn_cap)))
        out = pl.pallas_call(
            functools.partial(_fused_kernel, inv_total=inv_total),
            out_shape=jax.ShapeDtypeStruct((N, C, S), x.dtype),
            grid=(N // bn,),
            in_specs=[
                pl.BlockSpec((C, Hd), lambda i: (0, 0)),           # fc1_w^T
                pl.BlockSpec((C, Hd), lambda i: (0, 0)),           # fc2_w
                pl.BlockSpec((bn, C, S), lambda i: (i, 0, 0)),     # x slab
            ],
            out_specs=pl.BlockSpec((bn, C, S), lambda i: (i, 0, 0)),
            compiler_params=cparams(("parallel",)),
        )(w1t, w2, x2)
        return out.reshape(N, C, H, W)

    # ---------------- Path B: streaming two-pass (spatial tiling) ----------------
    if S % 128 == 0:
        TS = _pick_spatial_tile(S, C, isz, block_budget - wbuf)
        n_s = S // TS

        attn = pl.pallas_call(
            functools.partial(_pool_mlp_kernel, inv_total=inv_total),
            out_shape=jax.ShapeDtypeStruct((N, C, 1), jnp.float32),
            grid=(N, n_s),
            in_specs=[
                pl.BlockSpec((C, Hd), lambda n, s: (0, 0)),
                pl.BlockSpec((C, Hd), lambda n, s: (0, 0)),
                pl.BlockSpec((1, C, TS), lambda n, s: (n, 0, s)),
            ],
            out_specs=pl.BlockSpec((1, C, 1), lambda n, s: (n, 0, 0)),
            scratch_shapes=[pltpu.VMEM((C, 1), jnp.float32),       # running sum
                            pltpu.VMEM((C, 1), jnp.float32)],      # running max
            compiler_params=cparams(("parallel", "arbitrary")),
        )(w1t, w2, x2)

        out = pl.pallas_call(
            _apply_kernel,
            out_shape=jax.ShapeDtypeStruct((N, C, S), x.dtype),
            grid=(N, n_s),
            in_specs=[
                pl.BlockSpec((1, C, 1), lambda n, s: (n, 0, 0)),
                pl.BlockSpec((1, C, TS), lambda n, s: (n, 0, s)),
            ],
            out_specs=pl.BlockSpec((1, C, TS), lambda n, s: (n, 0, s)),
            compiler_params=cparams(("parallel", "parallel")),
        )(attn, x2)
        return out.reshape(N, C, H, W)

    # ---------------- Path C: channel-tiled fallback ----------------
    tc = _pick_channel_tile(C, S, isz, block_budget)
    n_c = C // tc

    sums, maxs = pl.pallas_call(
        _pool_channel_kernel,
        out_shape=(jax.ShapeDtypeStruct((N, C, 1), jnp.float32),
                   jax.ShapeDtypeStruct((N, C, 1), jnp.float32)),
        grid=(N, n_c),
        in_specs=[pl.BlockSpec((1, tc, S), lambda n, c: (n, c, 0))],
        out_specs=(pl.BlockSpec((1, tc, 1), lambda n, c: (n, c, 0)),
                   pl.BlockSpec((1, tc, 1), lambda n, c: (n, c, 0))),
        compiler_params=cparams(("parallel", "parallel")),
    )(x2)

    attn = pl.pallas_call(
        functools.partial(_mlp_kernel, inv_total=inv_total),
        out_shape=jax.ShapeDtypeStruct((N, C, 1), jnp.float32),
        grid=(N,),
        in_specs=[
            pl.BlockSpec((C, Hd), lambda n: (0, 0)),
            pl.BlockSpec((C, Hd), lambda n: (0, 0)),
            pl.BlockSpec((1, C, 1), lambda n: (n, 0, 0)),
            pl.BlockSpec((1, C, 1), lambda n: (n, 0, 0)),
        ],
        out_specs=pl.BlockSpec((1, C, 1), lambda n: (n, 0, 0)),
        compiler_params=cparams(("parallel",)),
    )(w1t, w2, sums, maxs)

    out = pl.pallas_call(
        _apply_kernel,
        out_shape=jax.ShapeDtypeStruct((N, C, S), x.dtype),
        grid=(N, n_c),
        in_specs=[
            pl.BlockSpec((1, tc, 1), lambda n, c: (n, c, 0)),
            pl.BlockSpec((1, tc, S), lambda n, c: (n, c, 0)),
        ],
        out_specs=pl.BlockSpec((1, tc, S), lambda n, c: (n, c, 0)),
        compiler_params=cparams(("parallel", "parallel")),
    )(attn, x2)
    return out.reshape(N, C, H, W)


def _reference(x, fc1_w, fc2_w):
    xf = x.astype(jnp.float32)
    Hd = fc1_w.shape[0]
    C = x.shape[1]
    w1 = fc1_w.reshape(Hd, C).astype(jnp.float32)
    w2 = fc2_w.reshape(C, Hd).astype(jnp.float32)

    avg = jnp.mean(xf, axis=(2, 3))                # (N, C)
    mx = jnp.max(xf, axis=(2, 3))                  # (N, C)

    def mlp(v):
        h = jax.nn.relu(v @ w1.T)                  # (N, Hd)
        return h @ w2.T                            # (N, C)

    attn = jax.nn.sigmoid(mlp(avg) + mlp(mx))      # (N, C)
    return (attn[:, :, None, None] * xf).astype(x.dtype)


if __name__ == "__main__":
    key = jax.random.PRNGKey(0)
    kx, k1, k2 = jax.random.split(key, 3)

    # in_planes must be >= 16 (the module uses in_planes // 16 hidden channels).
    N, C, H, W = 2, 32, 16, 16
    Hd = C // 16

    x = jax.random.normal(kx, (N, C, H, W), dtype=jnp.float32)
    # Kaiming-uniform-like init (nn.Conv2d default), bound = 1/sqrt(fan_in).
    b1 = 1.0 / np.sqrt(C * 1 * 1)
    b2 = 1.0 / np.sqrt(Hd * 1 * 1)
    fc1_w = jax.random.uniform(k1, (Hd, C, 1, 1), dtype=jnp.float32,
                               minval=-b1, maxval=b1)
    fc2_w = jax.random.uniform(k2, (C, Hd, 1, 1), dtype=jnp.float32,
                               minval=-b2, maxval=b2)

    out = channel_attention(x, fc1_w, fc2_w)
    jax.block_until_ready(out)

    ref = _reference(x, fc1_w, fc2_w)
    np.testing.assert_allclose(np.asarray(out), np.asarray(ref),
                               rtol=1e-5, atol=1e-5)
    print("KERNEL_OK")
</pallas_src>

<mosaic_0001>
module attributes {stable_mosaic.version = 11 : i64} {
  func.func @_fused_kernel(%arg0: i32, %arg1: memref<32x2xf32, #tpu.memory_space<vmem>>, %arg2: memref<32x2xf32, #tpu.memory_space<vmem>>, %arg3: memref<2x32x256xf32, #tpu.memory_space<vmem>>, %arg4: memref<2x32x256xf32, #tpu.memory_space<vmem>>) attributes {dimension_semantics = [#tpu.dimension_semantics<parallel>], iteration_bounds = array<i64: 1>, scalar_prefetch = 0 : i64, scratch_operands = 0 : i64, tpu.core_type = #tpu.core_type<tc>, window_params = [{pipeline_mode = #tpu.pipeline_mode<synchronous>, transform_indices = @transform_0, window_bounds = array<i64: 32, 2>}, {pipeline_mode = #tpu.pipeline_mode<synchronous>, transform_indices = @transform_1, window_bounds = array<i64: 32, 2>}, {transform_indices = @transform_2, window_bounds = array<i64: 2, 32, 256>}, {transform_indices = @transform_3, window_bounds = array<i64: 2, 32, 256>}]} {
    %c0 = arith.constant 0 : index
    %c0_0 = arith.constant 0 : index
    %c0_1 = arith.constant 0 : index
    %0 = vector.load %arg3[%c0, %c0_0, %c0_1] : memref<2x32x256xf32, #tpu.memory_space<vmem>>, vector<2x32x256xf32>
    %cst = arith.constant dense<0.000000e+00> : vector<2x32xf32>
    %1 = vector.multi_reduction <add>, %0, %cst [2] : vector<2x32x256xf32> to vector<2x32xf32>
    %2 = vector.shape_cast %1 : vector<2x32xf32> to vector<2x32x1xf32>
    %cst_2 = arith.constant dense<0xFF800000> : vector<2x32xf32>
    %3 = vector.multi_reduction <maximumf>, %0, %cst_2 [2] : vector<2x32x256xf32> to vector<2x32xf32>
    %4 = vector.shape_cast %3 : vector<2x32xf32> to vector<2x32x1xf32>
    %c0_3 = arith.constant 0 : index
    %c0_4 = arith.constant 0 : index
    %5 = vector.load %arg1[%c0_3, %c0_4] : memref<32x2xf32, #tpu.memory_space<vmem>>, vector<32x2xf32>
    %c0_5 = arith.constant 0 : index
    %c0_6 = arith.constant 0 : index
    %6 = vector.load %arg2[%c0_5, %c0_6] : memref<32x2xf32, #tpu.memory_space<vmem>>, vector<32x2xf32>
    %cst_7 = arith.constant 3.906250e-03 : f32
    %7 = vector.broadcast %cst_7 : f32 to vector<2x32x1xf32>
    %8 = arith.mulf %2, %7 : vector<2x32x1xf32>
    %9 = vector.shape_cast %5 : vector<32x2xf32> to vector<1x32x2xf32>
    %10 = vector.broadcast %9 : vector<1x32x2xf32> to vector<2x32x2xf32>
    %11 = vector.broadcast %8 : vector<2x32x1xf32> to vector<2x32x2xf32>
    %12 = arith.mulf %10, %11 : vector<2x32x2xf32>
    %cst_8 = arith.constant dense<0.000000e+00> : vector<2x2xf32>
    %13 = vector.multi_reduction <add>, %12, %cst_8 [1] : vector<2x32x2xf32> to vector<2x2xf32>
    %14 = vector.shape_cast %13 : vector<2x2xf32> to vector<2x1x2xf32>
    %cst_9 = arith.constant 0.000000e+00 : f32
    %15 = vector.broadcast %cst_9 : f32 to vector<2x1x2xf32>
    %16 = arith.maximumf %14, %15 : vector<2x1x2xf32>
    %17 = vector.shape_cast %6 : vector<32x2xf32> to vector<1x32x2xf32>
    %18 = vector.broadcast %17 : vector<1x32x2xf32> to vector<2x32x2xf32>
    %19 = vector.broadcast %16 : vector<2x1x2xf32> to vector<2x32x2xf32>
    %20 = arith.mulf %18, %19 : vector<2x32x2xf32>
    %cst_10 = arith.constant dense<0.000000e+00> : vector<2x32xf32>
    %21 = vector.multi_reduction <add>, %20, %cst_10 [2] : vector<2x32x2xf32> to vector<2x32xf32>
    %22 = vector.shape_cast %21 : vector<2x32xf32> to vector<2x32x1xf32>
    %23 = vector.shape_cast %5 : vector<32x2xf32> to vector<1x32x2xf32>
    %24 = vector.broadcast %23 : vector<1x32x2xf32> to vector<2x32x2xf32>
    %25 = vector.broadcast %4 : vector<2x32x1xf32> to vector<2x32x2xf32>
    %26 = arith.mulf %24, %25 : vector<2x32x2xf32>
    %cst_11 = arith.constant dense<0.000000e+00> : vector<2x2xf32>
    %27 = vector.multi_reduction <add>, %26, %cst_11 [1] : vector<2x32x2xf32> to vector<2x2xf32>
    %28 = vector.shape_cast %27 : vector<2x2xf32> to vector<2x1x2xf32>
    %cst_12 = arith.constant 0.000000e+00 : f32
    %29 = vector.broadcast %cst_12 : f32 to vector<2x1x2xf32>
    %30 = arith.maximumf %28, %29 : vector<2x1x2xf32>
    %31 = vector.shape_cast %6 : vector<32x2xf32> to vector<1x32x2xf32>
    %32 = vector.broadcast %31 : vector<1x32x2xf32> to vector<2x32x2xf32>
    %33 = vector.broadcast %30 : vector<2x1x2xf32> to vector<2x32x2xf32>
    %34 = arith.mulf %32, %33 : vector<2x32x2xf32>
    %cst_13 = arith.constant dense<0.000000e+00> : vector<2x32xf32>
    %35 = vector.multi_reduction <add>, %34, %cst_13 [2] : vector<2x32x2xf32> to vector<2x32xf32>
    %36 = vector.shape_cast %35 : vector<2x32xf32> to vector<2x32x1xf32>
    %37 = arith.addf %22, %36 : vector<2x32x1xf32>
    %38 = arith.negf %37 : vector<2x32x1xf32>
    %39 = math.exp %38 : vector<2x32x1xf32>
    %cst_14 = arith.constant 1.000000e+00 : f32
    %40 = vector.broadcast %cst_14 : f32 to vector<2x32x1xf32>
    %41 = arith.addf %40, %39 : vector<2x32x1xf32>
    %42 = arith.divf %40, %41 : vector<2x32x1xf32>
    %43 = vector.broadcast %42 : vector<2x32x1xf32> to vector<2x32x256xf32>
    %44 = arith.mulf %43, %0 : vector<2x32x256xf32>
    %c0_15 = arith.constant 0 : index
    %c0_16 = arith.constant 0 : index
    %c0_17 = arith.constant 0 : index
    %45 = vector.load %arg4[%c0_15, %c0_16, %c0_17] : memref<2x32x256xf32, #tpu.memory_space<vmem>>, vector<2x32x256xf32>
    tpu.vector_store %arg4[%c0_15, %c0_16, %c0_17], %44 {strides = array<i32>} : memref<2x32x256xf32, #tpu.memory_space<vmem>>, vector<2x32x256xf32>,
    return
  }
  func.func @transform_0(%arg0: i32) -> (i32, i32) {
    %c0_i32 = arith.constant 0 : i32
    %c0_i32_0 = arith.constant 0 : i32
    %c0_i32_1 = arith.constant 0 : i32
    return %c0_i32, %c0_i32_0 : i32, i32
  }
  func.func @transform_1(%arg0: i32) -> (i32, i32) {
    %c0_i32 = arith.constant 0 : i32
    %c0_i32_0 = arith.constant 0 : i32
    %c0_i32_1 = arith.constant 0 : i32
    return %c0_i32, %c0_i32_0 : i32, i32
  }
  func.func @transform_2(%arg0: i32) -> (i32, i32, i32) {
    %c0_i32 = arith.constant 0 : i32
    %c0_i32_0 = arith.constant 0 : i32
    %c0_i32_1 = arith.constant 0 : i32
    return %arg0, %c0_i32, %c0_i32_0 : i32, i32, i32
  }
  func.func @transform_3(%arg0: i32) -> (i32, i32, i32) {
    %c0_i32 = arith.constant 0 : i32
    %c0_i32_0 = arith.constant 0 : i32
    %c0_i32_1 = arith.constant 0 : i32
    return %arg0, %c0_i32, %c0_i32_0 : i32, i32, i32
  }
}

</mosaic_0001>

<bundles_post_ra>
// kernel: channel_attention.1
= control target key start
LH: loop header
LB: loop body
LE: loop exit
PB: predicated region body
PF: predicated region fallthrough
CT: control target
= control target key end

     0   :  { %vm102_vm0 = vcmask 15360   ;;  %s775_s2 = inlined_call_operand.vmem [shape: f32[2,32,256], index: 2, kind: input, shape index: {}]   ;;  %s776_s0 = inlined_call_operand.vmem [shape: f32[32,2], index: 0, kind: input, shape index: {}]   ;;  %s777_s1 = inlined_call_operand.vmem [shape: f32[32,2], index: 1, kind: input, shape index: {}]   ;;  %s778_s3 = inlined_call_operand.vmem [shape: f32[2,32,256], index: 3, kind: output, shape index: {}]  }
   0x1   :  { %v490_v0 = vld [vmem:[%s775_s2 + $0x40] sm:$0xff]  ;;  %v495_v1 = vld [vmem:[%s775_s2 + $0x48] sm:$0xff]  ;;  %v526_v9 = vld [vmem:[%s775_s2 + $0x50] sm:$0xff] }
   0x2   :  { %v500_v2 = vld [vmem:[%s775_s2 + $0x20] sm:$0xff]  ;;  %v42_v3 = vadd.f32 %v495_v1, %v490_v0  ;;  %v507_v4 = vld [vmem:[%s775_s2 + $0x28] sm:$0xff]  ;;  %v531_v10 = vld [vmem:[%s775_s2 + $0x58] sm:$0xff]  ;;  %v66_v19 = vmax.f32 %v490_v0, %v495_v1 }
   0x3   :  { %v512_v5 = vld [vmem:[%s775_s2] sm:$0xff]  ;;  %v517_v6 = vld [vmem:[%s775_s2 + $0x8] sm:$0xff]  ;;  %v36_v7 = vadd.f32 %v507_v4, %v500_v2  ;;  %v546_v13 = vld [vmem:[%s775_s2 + $0x10] sm:$0xff]  ;;  %v45_v15 = vadd.f32 %v531_v10, %v526_v9  ;;  %v69_v27 = vmax.f32 %v526_v9, %v531_v10  ;;  %v60_v29 = vmax.f32 %v500_v2, %v507_v4 }
   0x4   :  { %v30_v8 = vadd.f32 %v517_v6, %v512_v5  ;;  %43 = vadd.xlane.f32.xlu1 %v42_v3  ;;  %v536_v11 = vld [vmem:[%s775_s2 + $0x60] sm:$0xff]  ;;  %v541_v12 = vld [vmem:[%s775_s2 + $0x68] sm:$0xff]  ;;  %v551_v14 = vld [vmem:[%s775_s2 + $0x18] sm:$0xff]  ;;  %v54_v20 = vmax.f32 %v512_v5, %v517_v6 }
   0x5   :  { %37 = vadd.xlane.f32.xlu2 %v36_v7  ;;  %v48_v16 = vadd.f32 %v541_v12, %v536_v11  ;;  %v33_v17 = vadd.f32 %v551_v14, %v546_v13  ;;  %v57_v18 = vmax.f32 %v546_v13, %v551_v14  ;;  %v568_v21 = vld [vmem:[%s775_s2 + $0x30] sm:$0xff]  ;;  %v573_v22 = vld [vmem:[%s775_s2 + $0x38] sm:$0xff]  ;;  %v72_v28 = vmax.f32 %v536_v11, %v541_v12  ;;  %v79_v39 = vld [vmem:[%s776_s0 + $0x8] sm:$0xff] }
   0x6   :  { %31 = vadd.xlane.f32.xlu0 %v30_v8  ;;  %v578_v23 = vld [vmem:[%s775_s2 + $0x70] sm:$0xff]  ;;  %v583_v24 = vld [vmem:[%s775_s2 + $0x78] sm:$0xff]  ;;  %v39_v25 = vadd.f32 %v573_v22, %v568_v21  ;;  %v63_v30 = vmax.f32 %v568_v21, %v573_v22  ;;  %v78_v41 = vld [vmem:[%s776_s0] sm:$0xff] }
   0x7   :  { %v51_v26 = vadd.f32 %v583_v24, %v578_v23  ;;  %v75_v31 = vmax.f32 %v578_v23, %v583_v24  ;;  %v80_v50 = vld [vmem:[%s776_s0 + $0x10] sm:$0xff]  ;;  %v81_v58 = vld [vmem:[%s776_s0 + $0x18] sm:$0xff] }
   0xc   :  { %46 = vadd.xlane.f32.xlu1 %v45_v15 }
   0xd   :  { %49 = vadd.xlane.f32.xlu2 %v48_v16 }
   0xe   :  { %34 = vadd.xlane.f32.xlu0 %v33_v17 }
  0x14   :  { %58 = vmax.xlane.f32.xlu1 %v57_v18 }
  0x15   :  { %67 = vmax.xlane.f32.xlu2 %v66_v19 }
  0x16   :  { %55 = vmax.xlane.f32.xlu0 %v54_v20 }
  0x1c   :  { %40 = vadd.xlane.f32.xlu1 %v39_v25 }
  0x1d   :  { %52 = vadd.xlane.f32.xlu2 %v51_v26 }
  0x1e   :  { %70 = vmax.xlane.f32.xlu0 %v69_v27 }
  0x24   :  { %73 = vmax.xlane.f32.xlu1 %v72_v28 }
  0x25   :  { %64 = vmax.xlane.f32.xlu2 %v63_v30 }
  0x26   :  { %61 = vmax.xlane.f32.xlu0 %v60_v29 }
  0x2e   :  { %76 = vmax.xlane.f32.xlu0 %v75_v31 }
  0x77   :  { %v44_v32 = vpop.xlane.xlu1 %43 }
  0x78   :  { %v38_v33 = vpop.xlane.xlu2 %37  ;;  %v90_v46 = vmul.f32 0.00390625, %v44_v32 }
  0x79   :  { %v32_v34 = vpop.xlane.xlu0 %31  ;;  %v88_v48 = vmul.f32 0.00390625, %v38_v33 }
  0x7a   :  { %v86_v40 = vmul.f32 0.00390625, %v32_v34  ;;  %v98_v52 = vmul.f32 %v90_v46, %v78_v41 }
  0x7b   :  { %v96_v55 = vmul.f32 %v88_v48, %v80_v50 }
  0x7c   :  { %v94_v49 = vmul.f32 %v86_v40, %v78_v41  ;;  %v116_v63 = vsel %vm102_vm0, %v98_v52, 0.0 }
  0x7d   :  { %v106_v15 = vsel %vm102_vm0, %v96_v55, 0.0 }
  0x7e   :  { %v103_v56 = vsel %vm102_vm0, %v94_v49, 0.0 }
  0x7f   :  { %v47_v35 = vpop.xlane.xlu1 %46 }
  0x80   :  { %v50_v36 = vpop.xlane.xlu2 %49  ;;  %v91_v47 = vmul.f32 0.00390625, %v47_v35 }
  0x81   :  { %v35_v37 = vpop.xlane.xlu0 %34  ;;  %v92_v54 = vmul.f32 0.00390625, %v50_v36 }
  0x82   :  { %v87_v38 = vmul.f32 0.00390625, %v35_v37  ;;  %v99_v53 = vmul.f32 %v91_v47, %v79_v39 }
  0x83   :  { %v100_v7 = vmul.f32 %v92_v54, %v80_v50 }
  0x84   :  { %v95_v43 = vmul.f32 %v87_v38, %v79_v39  ;;  %v117_v3 = vsel %vm102_vm0, %v99_v53, 0.0 }
  0x85   :  { %v118_v25 = vadd.f32 %v117_v3, %v116_v63  ;;  %v119_v27 = vsel %vm102_vm0, %v100_v7, 0.0 }
  0x86   :  { %v104_v51 = vsel %vm102_vm0, %v95_v43, 0.0 }
  0x87   :  { %v59_v42 = vpop.xlane.xlu1 %58  ;;  %v105_v57 = vadd.f32 %v104_v51, %v103_v56  ;;  %v120_v34 = vadd.f32 %v119_v27, %v118_v25 }
  0x88   :  { %v68_v44 = vpop.xlane.xlu2 %67  ;;  %v164_v17 = vmul.f32 %v79_v39, %v59_v42 }
  0x89   :  { %v56_v45 = vpop.xlane.xlu0 %55  ;;  %v107_v20 = vadd.f32 %v106_v15, %v105_v57  ;;  %v167_v42 = vmul.f32 %v78_v41, %v68_v44 }
  0x8a   :  { %v163_v18 = vmul.f32 %v78_v41, %v56_v45  ;;  %v172_v29 = vsel %vm102_vm0, %v164_v17, 0.0 }
  0x8b   :  { %v184_v54 = vsel %vm102_vm0, %v167_v42, 0.0 }
  0x8c   :  { %v171_v30 = vsel %vm102_vm0, %v163_v18, 0.0 }
  0x8d   :  { %v173_v43 = vadd.f32 %v172_v29, %v171_v30  ;;  %v84_v29 = vld [vmem:[%s777_s1 + $0x10] sm:$0xff]  ;;  %v83_v30 = vld [vmem:[%s777_s1 + $0x8] sm:$0xff] }
  0x8f   :  { %v41_v59 = vpop.xlane.xlu1 %40 }
  0x90   :  { %v53_v60 = vpop.xlane.xlu2 %52  ;;  %v89_v61 = vmul.f32 0.00390625, %v41_v59 }
  0x91   :  { %v71_v62 = vpop.xlane.xlu0 %70  ;;  %v93_v8 = vmul.f32 0.00390625, %v53_v60 }
  0x92   :  { %v97_v16 = vmul.f32 %v89_v61, %v81_v58  ;;  %v168_v37 = vmul.f32 %v79_v39, %v71_v62 }
  0x93   :  { %v101_v19 = vmul.f32 %v93_v8, %v81_v58 }
  0x94   :  { %v108_v26 = vsel %vm102_vm0, %v97_v16, 0.0  ;;  %v185_v52 = vsel %vm102_vm0, %v168_v37, 0.0 }
  0x95   :  { %v109_v28 = vadd.f32 %v108_v26, %v107_v20  ;;  %v121_v31 = vsel %vm102_vm0, %v101_v19, 0.0  ;;  %v186_v57 = vadd.f32 %v185_v52, %v184_v54 }
  0x96   :  { %v122_v45 = vadd.f32 %v121_v31, %v120_v34  ;;  %v82_v31 = vld [vmem:[%s777_s1] sm:$0xff] }
  0x97   :  { %v110_v32 = vrot.slane %v109_v28, 4  ;;  %v74_v33 = vpop.xlane.xlu1 %73 }
  0x98   :  { %v65_v36 = vpop.xlane.xlu2 %64  ;;  %v169_v47 = vmul.f32 %v80_v50, %v74_v33  ;;  %v123_v55 = vrot.slane %v122_v45, 4 }
  0x99   :  { %v62_v35 = vpop.xlane.xlu0 %61  ;;  %v166_v40 = vmul.f32 %v81_v58, %v65_v36  ;;  %v111_v46 = vadd.f32 %v110_v32, %v109_v28 }
  0x9a   :  { %v165_v38 = vmul.f32 %v80_v50, %v62_v35  ;;  %v187_v39 = vsel %vm102_vm0, %v169_v47, 0.0  ;;  %v124_v61 = vadd.f32 %v123_v55, %v122_v45  ;;  %v85_v47 = vld [vmem:[%s777_s1 + $0x18] sm:$0xff] }
  0x9b   :  { %v176_v49 = vsel %vm102_vm0, %v166_v40, 0.0  ;;  %v112_v56 = vrot.slane %v111_v46, 2  ;;  %v188_v60 = vadd.f32 %v187_v39, %v186_v57 }
  0x9c   :  { %v174_v48 = vsel %vm102_vm0, %v165_v38, 0.0  ;;  %v125_v16 = vrot.slane %v124_v61, 2 }
  0x9d   :  { %v175_v51 = vadd.f32 %v174_v48, %v173_v43  ;;  %v113_v62 = vadd.f32 %v112_v56, %v111_v46 }
  0x9e   :  { %v126_v26 = vadd.f32 %v125_v16, %v124_v61 }
  0x9f   :  { %v177_v53 = vadd.f32 %v176_v49, %v175_v51  ;;  %v114_v17 = vrot.slane %v113_v62, 1 }
  0xa0   :  { %v127_v36 = vrot.slane %v126_v26, 1 }
  0xa1   :  { %v178_v41 = vrot.slane %v177_v53, 4  ;;  %v77_v44 = vpop.xlane.xlu0 %76  ;;  %v115_v27 = vadd.f32 %v114_v17, %v113_v62 }
  0xa2   :  { %v170_v59 = vmul.f32 %v81_v58, %v77_v44  ;;  %v128_v49 = vadd.f32 %v127_v36, %v126_v26 }
  0xa3   :  { %v179_v50 = vadd.f32 %v178_v41, %v177_v53  ;;  %v129_v37 = vmax.f32 %v115_v27, 0.0 }
  0xa4   :  { %v189_v63 = vsel %vm102_vm0, %v170_v59, 0.0  ;;  %v130_v54 = vmax.f32 %v128_v49, 0.0 }
  0xa5   :  { %v180_v3 = vrot.slane %v179_v50, 2  ;;  %v190_v7 = vadd.f32 %v189_v63, %v188_v60  ;;  %v132_v48 = vmul.f32 %v129_v37, %v83_v30  ;;  %v131_v39 = vmul.f32 %v129_v37, %v82_v31 }
  0xa6   :  { %v135_v56 = vmul.f32 %v130_v54, %v82_v31  ;;  %v133_v57 = vmul.f32 %v129_v37, %v84_v29  ;;  %v138_v60 = vmul.f32 %v130_v54, %v85_v47  ;;  %v136_v61 = vmul.f32 %v130_v54, %v83_v30 }
  0xa7   :  { %v181_v8 = vadd.f32 %v180_v3, %v179_v50  ;;  %v191_v15 = vrot.slane %v190_v7, 4  ;;  %v142_v53 = vsel %vm102_vm0, %v132_v48, 0.0  ;;  %v139_v44 = vsel %vm102_vm0, %v131_v39, 0.0 }
  0xa8   :  { %v151_v41 = vsel %vm102_vm0, %v135_v56, 0.0  ;;  %v145_v59 = vsel %vm102_vm0, %v133_v57, 0.0  ;;  %v134_v50 = vmul.f32 %v129_v37, %v85_v47  ;;  %v160_v62 = vsel %vm102_vm0, %v138_v60, 0.0 }
  0xa9   :  { %v182_v18 = vrot.slane %v181_v8, 1  ;;  %v192_v19 = vadd.f32 %v191_v15, %v190_v7  ;;  %v154_v3 = vsel %vm102_vm0, %v136_v61, 0.0 }
  0xaa   :  { %v148_v63 = vsel %vm102_vm0, %v134_v50, 0.0 }
  0xab   :  { %v183_v20 = vadd.f32 %v182_v18, %v181_v8  ;;  %v193_v25 = vrot.slane %v192_v19, 2  ;;  %v137_v8 = vmul.f32 %v130_v54, %v84_v29 }
  0xad   :  { %v197_v28 = vmax.f32 %v183_v20, 0.0  ;;  %v194_v58 = vadd.f32 %v193_v25, %v192_v19  ;;  %v157_v17 = vsel %vm102_vm0, %v137_v8, 0.0 }
  0xaf   :  { %v195_v32 = vrot.slane %v194_v58, 1  ;;  %v201_v33 = vmul.f32 %v197_v28, %v84_v29  ;;  %v200_v34 = vmul.f32 %v197_v28, %v83_v30  ;;  %v199_v35 = vmul.f32 %v197_v28, %v82_v31 }
  0xb0   :  { %v202_v51 = vmul.f32 %v197_v28, %v85_v47 }
  0xb1   :  { %v196_v38 = vadd.f32 %v195_v32, %v194_v58  ;;  %v213_v40 = vsel %vm102_vm0, %v201_v33, 0.0  ;;  %v210_v42 = vsel %vm102_vm0, %v200_v34, 0.0  ;;  %v207_v43 = vsel %vm102_vm0, %v199_v35, 0.0 }
  0xb2   :  { %214 = vadd.xlane.f32.xlu2 %v213_v40  ;;  %211 = vadd.xlane.f32.xlu1 %v210_v42  ;;  %v216_v55 = vsel %vm102_vm0, %v202_v51, 0.0 }
  0xb3   :  { %v198_v45 = vmax.f32 %v196_v38, 0.0  ;;  %208 = vadd.xlane.f32.xlu0 %v207_v43 }
  0xb5   :  { %v203_v46 = vmul.f32 %v198_v45, %v82_v31  ;;  %v204_v7 = vmul.f32 %v198_v45, %v83_v30  ;;  %v205_v15 = vmul.f32 %v198_v45, %v84_v29  ;;  %v206_v19 = vmul.f32 %v198_v45, %v85_v47 }
  0xb7   :  { %v219_v52 = vsel %vm102_vm0, %v203_v46, 0.0  ;;  %v222_v16 = vsel %vm102_vm0, %v204_v7, 0.0  ;;  %v225_v18 = vsel %vm102_vm0, %v205_v15, 0.0  ;;  %v228_v20 = vsel %vm102_vm0, %v206_v19, 0.0 }
  0xba   :  { %220 = vadd.xlane.f32.xlu1 %v219_v52  ;;  %143 = vadd.xlane.f32.xlu2 %v142_v53 }
  0xbb   :  { %217 = vadd.xlane.f32.xlu0 %v216_v55 }
  0xc2   :  { %152 = vadd.xlane.f32.xlu2 %v151_v41  ;;  %140 = vadd.xlane.f32.xlu1 %v139_v44 }
  0xc3   :  { %146 = vadd.xlane.f32.xlu0 %v145_v59 }
  0xca   :  { %161 = vadd.xlane.f32.xlu2 %v160_v62  ;;  %149 = vadd.xlane.f32.xlu1 %v148_v63 }
  0xcb   :  { %155 = vadd.xlane.f32.xlu0 %v154_v3 }
  0xd2   :  { %223 = vadd.xlane.f32.xlu2 %v222_v16  ;;  %158 = vadd.xlane.f32.xlu1 %v157_v17 }
  0xd3   :  { %226 = vadd.xlane.f32.xlu0 %v225_v18 }
  0xda   :  { %229 = vadd.xlane.f32.xlu1 %v228_v20 }
 0x125   :  { %v215_v25 = vpop.xlane.xlu2 %214  ;;  %v212_v26 = vpop.xlane.xlu1 %211 }
 0x126   :  { %v209_v27 = vpop.xlane.xlu0 %208 }
 0x12d   :  { %v221_v28 = vpop.xlane.xlu1 %220  ;;  %v144_v58 = vpop.xlane.xlu2 %143 }
 0x12e   :  { %v218_v30 = vpop.xlane.xlu0 %217  ;;  %v232_v29 = vadd.f32 %v212_v26, %v144_v58 }
 0x130   :  { %v428_v31 = vmul.f32 -1.442695, %v232_v29 }
 0x132   :  { %435 = vpow2.f32 %v428_v31 }
 0x135   :  { %v153_v32 = vpop.xlane.xlu2 %152  ;;  %v141_v33 = vpop.xlane.xlu1 %140 }
 0x136   :  { %v147_v34 = vpop.xlane.xlu0 %146  ;;  %v235_v35 = vadd.f32 %v221_v28, %v153_v32  ;;  %v231_v36 = vadd.f32 %v209_v27, %v141_v33 }
 0x137   :  { %v233_v37 = vadd.f32 %v215_v25, %v147_v34 }
 0x138   :  { %v436_v38 = vpop.eup %435  ;;  %v431_v40 = vmul.f32 -1.442695, %v235_v35  ;;  %v427_v45 = vmul.f32 -1.442695, %v231_v36 }
 0x139   :  { %v264_v42 = vadd.f32 1.0, %v436_v38  ;;  %v429_v43 = vmul.f32 -1.442695, %v233_v37 }
 0x13a   :  { %437 = vpow2.f32 %v431_v40 }
 0x13b   :  { %439 = vrcp.f32 %v264_v42  ;;  %v295_v59 = vand.u32 2147483647, %v264_v42  ;;  %v297_v60 = vand.u32 2147483648, %v264_v42  ;;  %vm291_vm2 = vweird.f32 %v264_v42 }
 0x13c   :  { %441 = vpow2.f32 %v429_v43 }
 0x13d   :  { %443 = vpow2.f32 %v427_v45  ;;  %v655_v46 = vpop.xlane.xlu2 %161  ;;  %v150_v47 = vpop.xlane.xlu1 %149  ;;  %vm296_vm4 = vcmp.eq.f32.partialorder %v295_v59, 8.507059e+37  ;;  %v298_v19 = vor.u32 1.1754944e-38, %v297_v60 }
 0x13e   :  { %v156_v48 = vpop.xlane.xlu0 %155  ;;  %v234_v49 = vadd.f32 %v218_v30, %v150_v47 }
 0x140   :  { %v438_v51 = vpop.eup %437  ;;  %v430_v52 = vmul.f32 -1.442695, %v234_v49 }
 0x141   :  { %v440_v53 = vpop.eup %439  ;;  %v657_v54 = vadd.f32 1.0, %v438_v51 }
 0x142   :  { %v442_v55 = vpop.eup %441  ;;  %v287_v56 = vmul.f32 %v440_v53, %v264_v42  ;;  %445 = vpow2.f32 %v430_v52  ;;  %vm292_vm1 = vweird.f32 %v440_v53 }
 0x143   :  { %v444_v39 = vpop.eup %443  ;;  %v659_v57 = vadd.f32 1.0, %v442_v55  ;;  %447 = vrcp.f32 %v657_v54  ;;  %v340_v62 = vand.u32 2147483647, %v657_v54  ;;  %v342_v63 = vand.u32 2147483648, %v657_v54  ;;  %vm293_vm3 = vmor %vm291_vm2, %vm292_vm1 }
 0x144   :  { %v288_v41 = vsub.f32 1.0, %v287_v56  ;;  %v662_v44 = vadd.f32 1.0, %v444_v39  ;;  %vm336_vm5 = vweird.f32 %v657_v54 }
 0x145   :  { %449 = vrcp.f32 %v659_v57  ;;  %v159_v50 = vpop.xlane.xlu1 %158  ;;  %v224_v3 = vpop.xlane.xlu2 %223  ;;  %v310_v15 = vand.u32 2147483647, %v659_v57  ;;  %v312_v16 = vand.u32 2147483648, %v659_v57  ;;  %vm306_vm6 = vweird.f32 %v659_v57 }
 0x146   :  { %v289_v61 = vmul.f32 %v440_v53, %v288_v41  ;;  %451 = vrcp.f32 %v662_v44  ;;  %v227_v17 = vpop.xlane.xlu0 %226  ;;  %v280_v27 = vand.u32 2147483647, %v662_v44  ;;  %v236_v28 = vadd.f32 %v224_v3, %v156_v48 }
 0x147   :  { %vm676_vm7 = vcmp.eq.f32.partialorder %v340_v62, 8.507059e+37  ;;  %v343_v31 = vor.u32 1.1754944e-38, %v342_v63  ;;  %v237_v32 = vadd.f32 %v227_v17, %v159_v50  ;;  %vm684_vm8 = vcmp.eq.f32.partialorder %v310_v15, 8.507059e+37 }
 0x148   :  { %v446_v7 = vpop.eup %445  ;;  %v290_v8 = vadd.f32 %v440_v53, %v289_v61  ;;  %v313_v38 = vor.u32 1.1754944e-38, %v312_v16  ;;  %vm276_vm9 = vweird.f32 %v662_v44  ;;  %v282_v43 = vand.u32 2147483648, %v662_v44 }
 0x149   :  { %v448_v18 = vpop.eup %447  ;;  %v671_v20 = vadd.f32 1.0, %v446_v7  ;;  %vm694_vm10 = vcmp.eq.f32.partialorder %v280_v27, 8.507059e+37  ;;  %v432_v47 = vmul.f32 -1.442695, %v236_v28  ;;  %v433_v52 = vmul.f32 -1.442695, %v237_v32 }
 0x14a   :  { %v294_v25 = vsel %vm293_vm3, %v440_v53, %v290_v8  ;;  %v332_v26 = vmul.f32 %v448_v18, %v657_v54  ;;  %vm337_vm11 = vweird.f32 %v448_v18 }
 0x14b   :  { %v450_v58 = vpop.eup %449  ;;  %v299_v30 = vsel %vm296_vm4, %v298_v19, %v294_v25  ;;  %453 = vrcp.f32 %v671_v20  ;;  %vm338_vm14 = vmor %vm336_vm5, %vm337_vm11  ;;  %v325_v50 = vand.u32 2147483647, %v671_v20  ;;  %v327_v63 = vand.u32 2147483648, %v671_v20 }
 0x14c   :  { %v452_v33 = vpop.eup %451  ;;  %v393_v34 = vmul.f32 %v299_v30, %v546_v13  ;;  %v394_v35 = vmul.f32 %v299_v30, %v551_v14  ;;  %v302_v36 = vmul.f32 %v450_v58, %v659_v57  ;;  %v333_v40 = vsub.f32 1.0, %v332_v26 }
 0x14d   :  { %v272_v42 = vmul.f32 %v452_v33, %v662_v44  ;;  %v230_v45 = vpop.xlane.xlu1 %229  ;;  %vm307_vm12 = vweird.f32 %v450_v58  ;;  %455 = vpow2.f32 %v432_v47  ;;  %vm277_vm13 = vweird.f32 %v452_v33 }
 0x14e   :  { %409 = vst [vmem:[%s778_s3 + $0x10] sm:$0xff] %v393_v34  ;;  %v303_v13 = vsub.f32 1.0, %v302_v36  ;;  %v238_v48 = vadd.f32 %v230_v45, %v655_v46  ;;  %v334_v49 = vmul.f32 %v448_v18, %v333_v40  ;;  %457 = vpow2.f32 %v433_v52  ;;  %vm308_vm15 = vmor %vm306_vm6, %vm307_vm12 }
 0x14f   :  { %410 = vst [vmem:[%s778_s3 + $0x18] sm:$0xff] %v394_v35  ;;  %v273_v51 = vsub.f32 1.0, %v272_v42  ;;  %v283_v46 = vor.u32 1.1754944e-38, %v282_v43  ;;  %vm278_vm0 = vmor %vm276_vm9, %vm277_vm13  ;;  %vm321_vm2 = vweird.f32 %v671_v20  ;;  %vm326_vm4 = vcmp.eq.f32.partialorder %v325_v50, 8.507059e+37 }
 0x150   :  { %v304_v53 = vmul.f32 %v450_v58, %v303_v13  ;;  %v434_v55 = vmul.f32 -1.442695, %v238_v48  ;;  %v335_v39 = vadd.f32 %v448_v18, %v334_v49 }
 0x151   :  { %v454_v56 = vpop.eup %453  ;;  %v274_v41 = vmul.f32 %v452_v33, %v273_v51 }
 0x152   :  { %v305_v59 = vadd.f32 %v450_v58, %v304_v53  ;;  %v317_v60 = vmul.f32 %v454_v56, %v671_v20  ;;  %v339_v61 = vsel %vm338_vm14, %v448_v18, %v335_v39  ;;  %459 = vpow2.f32 %v434_v55 }
 0x153   :  { %v275_v62 = vadd.f32 %v452_v33, %v274_v41  ;;  %v344_v7 = vsel %vm676_vm7, %v343_v31, %v339_v61  ;;  %vm322_vm1 = vweird.f32 %v454_v56  ;;  %v456_v17 = vpop.eup %455 }
 0x154   :  { %v309_v3 = vsel %vm308_vm15, %v450_v58, %v305_v59  ;;  %v318_v54 = vsub.f32 1.0, %v317_v60  ;;  %v399_v57 = vmul.f32 %v344_v7, %v490_v0  ;;  %v400_v15 = vmul.f32 %v344_v7, %v495_v1  ;;  %v458_v26 = vpop.eup %457  ;;  %vm323_vm3 = vmor %vm321_vm2, %vm322_vm1 }
 0x155   :  { %v314_v8 = vsel %vm684_vm8, %v313_v38, %v309_v3  ;;  %v279_v16 = vsel %vm278_vm0, %v452_v33, %v275_v62  ;;  %v268_v0 = vadd.f32 1.0, %v456_v17  ;;  %v328_v58 = vor.u32 1.1754944e-38, %v327_v63 }
 0x156   :  { %v395_v18 = vmul.f32 %v314_v8, %v500_v2  ;;  %v396_v19 = vmul.f32 %v314_v8, %v507_v4  ;;  %v284_v25 = vsel %vm694_vm10, %v283_v46, %v279_v16  ;;  %v319_v44 = vmul.f32 %v454_v56, %v318_v54  ;;  %415 = vst [vmem:[%s778_s3 + $0x40] sm:$0xff] %v399_v57 }
 0x157   :  { %v391_v27 = vmul.f32 %v284_v25, %v512_v5  ;;  %v392_v1 = vmul.f32 %v284_v25, %v517_v6  ;;  %v269_v4 = vadd.f32 1.0, %v458_v26  ;;  %461 = vrcp.f32 %v268_v0  ;;  %416 = vst [vmem:[%s778_s3 + $0x48] sm:$0xff] %v400_v15 }
 0x158   :  { %411 = vst [vmem:[%s778_s3 + $0x20] sm:$0xff] %v395_v18  ;;  %v320_v2 = vadd.f32 %v454_v56, %v319_v44  ;;  %v460_v28 = vpop.eup %459  ;;  %v355_v36 = vand.u32 2147483647, %v268_v0  ;;  %v357_v37 = vand.u32 2147483648, %v268_v0  ;;  %vm351_vm7 = vweird.f32 %v268_v0 }
 0x159   :  { %412 = vst [vmem:[%s778_s3 + $0x28] sm:$0xff] %v396_v19  ;;  %463 = vrcp.f32 %v269_v4  ;;  %v270_v29 = vadd.f32 1.0, %v460_v28  ;;  %v370_v38 = vand.u32 2147483647, %v269_v4  ;;  %v372_v42 = vand.u32 2147483648, %v269_v4 }
 0x15a   :  { %v324_v5 = vsel %vm323_vm3, %v454_v56, %v320_v2  ;;  %407 = vst [vmem:[%s778_s3] sm:$0xff] %v391_v27  ;;  %vm356_vm8 = vcmp.eq.f32.partialorder %v355_v36, 8.507059e+37  ;;  %vm366_vm9 = vweird.f32 %v269_v4  ;;  %v358_v14 = vor.u32 1.1754944e-38, %v357_v37 }
 0x15b   :  { %v329_v6 = vsel %vm326_vm4, %v328_v58, %v324_v5  ;;  %408 = vst [vmem:[%s778_s3 + $0x8] sm:$0xff] %v392_v1  ;;  %465 = vrcp.f32 %v270_v29  ;;  %vm371_vm11 = vcmp.eq.f32.partialorder %v370_v38, 8.507059e+37  ;;  %v373_v51 = vor.u32 1.1754944e-38, %v372_v42 }
 0x15c   :  { %v397_v20 = vmul.f32 %v329_v6, %v568_v21  ;;  %v398_v30 = vmul.f32 %v329_v6, %v573_v22  ;;  %v385_v52 = vand.u32 2147483647, %v270_v29  ;;  %v387_v53 = vand.u32 2147483648, %v270_v29 }
 0x15d   :  { %v462_v31 = vpop.eup %461  ;;  %vm381_vm14 = vweird.f32 %v270_v29 }
 0x15e   :  { %413 = vst [vmem:[%s778_s3 + $0x30] sm:$0xff] %v397_v20  ;;  %v347_v33 = vmul.f32 %v462_v31, %v268_v0  ;;  %vm352_vm5 = vweird.f32 %v462_v31  ;;  %v388_v62 = vor.u32 1.1754944e-38, %v387_v53  ;;  %vm386_vm0 = vcmp.eq.f32.partialorder %v385_v52, 8.507059e+37 }
 0x15f   :  { %414 = vst [vmem:[%s778_s3 + $0x38] sm:$0xff] %v398_v30  ;;  %v464_v32 = vpop.eup %463  ;;  %vm353_vm10 = vmor %vm351_vm7, %vm352_vm5 }
 0x160   :  { %v362_v34 = vmul.f32 %v464_v32, %v269_v4  ;;  %v348_v35 = vsub.f32 1.0, %v347_v33  ;;  %vm367_vm6 = vweird.f32 %v464_v32 }
 0x161   :  { %v466_v22 = vpop.eup %465  ;;  %vm368_vm12 = vmor %vm366_vm9, %vm367_vm6 }
 0x162   :  { %v363_v21 = vsub.f32 1.0, %v362_v34  ;;  %v349_v40 = vmul.f32 %v462_v31, %v348_v35  ;;  %v377_v45 = vmul.f32 %v466_v22, %v270_v29  ;;  %vm382_vm13 = vweird.f32 %v466_v22 }
 0x163   :  { %vm383_vm15 = vmor %vm381_vm14, %vm382_vm13 }
 0x164   :  { %v364_v43 = vmul.f32 %v464_v32, %v363_v21  ;;  %v350_v13 = vadd.f32 %v462_v31, %v349_v40  ;;  %v378_v48 = vsub.f32 1.0, %v377_v45 }
 0x166   :  { %v365_v47 = vadd.f32 %v464_v32, %v364_v43  ;;  %v354_v49 = vsel %vm353_vm10, %v462_v31, %v350_v13  ;;  %v379_v39 = vmul.f32 %v466_v22, %v378_v48 }
 0x167   :  { %v359_v55 = vsel %vm356_vm8, %v358_v14, %v354_v49 }
 0x168   :  { %v369_v56 = vsel %vm368_vm12, %v464_v32, %v365_v47  ;;  %v401_v41 = vmul.f32 %v359_v55, %v526_v9  ;;  %v402_v59 = vmul.f32 %v359_v55, %v531_v10  ;;  %v380_v61 = vadd.f32 %v466_v22, %v379_v39 }
 0x169   :  { %v374_v46 = vsel %vm371_vm11, %v373_v51, %v369_v56 }
 0x16a   :  { %v403_v60 = vmul.f32 %v374_v46, %v536_v11  ;;  %v404_v50 = vmul.f32 %v374_v46, %v541_v12  ;;  %417 = vst [vmem:[%s778_s3 + $0x50] sm:$0xff] %v401_v41  ;;  %v384_v9 = vsel %vm383_vm15, %v466_v22, %v380_v61 }
 0x16b   :  { %418 = vst [vmem:[%s778_s3 + $0x58] sm:$0xff] %v402_v59  ;;  %v389_v10 = vsel %vm386_vm0, %v388_v62, %v384_v9 }
 0x16c   :  { %419 = vst [vmem:[%s778_s3 + $0x60] sm:$0xff] %v403_v60  ;;  %v405_v11 = vmul.f32 %v389_v10, %v578_v23  ;;  %v406_v12 = vmul.f32 %v389_v10, %v583_v24 }
 0x16d   :  { %420 = vst [vmem:[%s778_s3 + $0x68] sm:$0xff] %v404_v50 }
 0x16e   :  { %421 = vst [vmem:[%s778_s3 + $0x70] sm:$0xff] %v405_v11 }
 0x16f   :  { %422 = vst [vmem:[%s778_s3 + $0x78] sm:$0xff] %v406_v12 }

</bundles_post_ra>
